<compile_context>
chip_gen: v6e
topology: v6e:2x2x1
jax: 0.10.0
libtpu: 0.0.40
codegen_flags: <defaults>
</compile_context>

<pallas_src>
import functools

import jax
import jax.numpy as jnp
from jax.experimental import pallas as pl
from jax.experimental.pallas import tpu as pltpu

EMBEDDING_DIMS = [(6, 3), (3, 1), (2, 1), (3, 1), (4, 2), (5, 2)]
NUM_FEATS = len(EMBEDDING_DIMS)
TOTAL_CATS = sum(n for n, _ in EMBEDDING_DIMS)   # 23 stacked categories
EMB_OUT = sum(d for _, d in EMBEDDING_DIMS)      # 10 = concat embedding dim
CAT_PAD = 128                                    # one-hot axis padded to a lane-friendly size
HIDDEN = 256
OUT = 512

# Per-feature row offset into the stacked (block-diagonal) embedding table.
OFFSETS = tuple(int(sum(n for n, _ in EMBEDDING_DIMS[:i])) for i in range(NUM_FEATS))


def _round_up(x, m):
    return ((x + m - 1) // m) * m


def clinicalnet_kernel(x_ref, wf_ref, bf_ref, out_ref):
    """One batch tile: multi-hot build -> single fused (emb+Linear1+Linear2) matmul -> ReLU."""
    tb = x_ref.shape[0]

    # Multi-hot (tb, CAT_PAD): one 1 per categorical feature, disjoint column ranges,
    # built as OR of compares then a single cast (exact in bf16 since values are 0/1).
    iota = jax.lax.broadcasted_iota(jnp.int32, (tb, CAT_PAD), 1)
    mh = None
    for i, (n, _) in enumerate(EMBEDDING_DIMS):
        # NOTE: clip maps out-of-range indices to the last valid category
        # (PyTorch nn.Embedding would raise); validate upstream if that matters.
        gi = jnp.clip(x_ref[:, i:i + 1], 0, n - 1) + OFFSETS[i]
        hit = iota == gi
        mh = hit if mh is None else jnp.logical_or(mh, hit)
    mh = mh.astype(jnp.bfloat16)

    # Fully fused network: out = relu(mh @ (blockdiag(emb) @ W1 @ W2) + (b1 @ W2 + b2)).
    # Dropouts are identity at inference; ReLU is the only nonlinearity and sits at the end.
    y = jnp.dot(mh, wf_ref[...], preferred_element_type=jnp.float32) + bf_ref[...]
    out_ref[...] = jnp.maximum(y, 0.0).astype(out_ref.dtype)


@functools.partial(jax.jit, static_argnames=("tb", "min_tiles", "out_dtype"))
def clinicalnet_forward(x_int, w_full, b_full, tb=1024, min_tiles=2, out_dtype=jnp.float32):
    """x_int: (B, 6) int32 per-column categorical indices. Returns (B, 512)."""
    B = x_int.shape[0]

    # Padding-aware tile selection; min_tiles=2 keeps both v7x TensorCores busy.
    num_tiles = max(min_tiles, pl.cdiv(B, tb))
    TB = _round_up(pl.cdiv(B, num_tiles), 8)       # batch tile (multiple of 8 sublanes)
    Bp = TB * num_tiles
    if Bp != B:
        # Pad with index 0 (valid for every feature); padded rows are dropped below.
        x_int = jnp.pad(x_int, ((0, Bp - B), (0, 0)))

    out = pl.pallas_call(
        clinicalnet_kernel,
        out_shape=jax.ShapeDtypeStruct((Bp, OUT), out_dtype),
        grid_spec=pltpu.PrefetchScalarGridSpec(
            num_scalar_prefetch=0,
            grid=(num_tiles,),
            in_specs=[
                pl.BlockSpec((TB, NUM_FEATS), lambda i: (i, 0)),   # batch-tiled indices
                pl.BlockSpec((CAT_PAD, OUT), lambda i: (0, 0)),    # fused weight, VMEM-resident
                pl.BlockSpec((1, OUT), lambda i: (0, 0)),          # fused bias, VMEM-resident
            ],
            out_specs=pl.BlockSpec((TB, OUT), lambda i: (i, 0)),
        ),
        compiler_params=pltpu.CompilerParams(
            dimension_semantics=("parallel",),        # megacore sharding on v7x
            vmem_limit_bytes=32 * 1024 * 1024,        # plenty of headroom even at TB=2048
        ),
    )(x_int, w_full, b_full)

    return out[:B] if Bp != B else out


def make_params(key):
    keys = jax.random.split(key, NUM_FEATS + 2)

    # nn.Embedding default init ~ N(0, 1)
    tables = [jax.random.normal(keys[i], (n, d), jnp.float32)
              for i, (n, d) in enumerate(EMBEDDING_DIMS)]

    # nn.Linear-style init: U(-1/sqrt(fan_in), 1/sqrt(fan_in)), stored as (in, out).
    def linear_init(k, fan_in, fan_out):
        kw, kb = jax.random.split(k)
        bound = 1.0 / float(fan_in) ** 0.5
        w = jax.random.uniform(kw, (fan_in, fan_out), jnp.float32, -bound, bound)
        b = jax.random.uniform(kb, (1, fan_out), jnp.float32, -bound, bound)
        return w, b

    w1, b1 = linear_init(keys[NUM_FEATS], EMB_OUT, HIDDEN)   # (10, 256)
    w2, b2 = linear_init(keys[NUM_FEATS + 1], HIDDEN, OUT)   # (256, 512)

    # Block-diagonal stacked embedding table (23, 10).
    emb_stack = jnp.zeros((TOTAL_CATS, EMB_OUT), jnp.float32)
    ro = co = 0
    for t, (n, d) in zip(tables, EMBEDDING_DIMS):
        emb_stack = emb_stack.at[ro:ro + n, co:co + d].set(t)
        ro += n
        co += d

    # Full f32 fold of embedding + Linear1 + Linear2, single bf16 cast at the end.
    w_full_f32 = (emb_stack @ w1) @ w2                          # (23, 512)
    w_full = (jnp.zeros((CAT_PAD, OUT), jnp.float32)
              .at[:TOTAL_CATS, :].set(w_full_f32)
              .astype(jnp.bfloat16))                            # (128, 512) bf16
    b_full = b1 @ w2 + b2                                       # (1, 512) f32 (added post-accum)

    return tables, w1, b1, w2, b2, w_full, b_full


def reference_forward(x_int, tables, w1, b1, w2, b2):
    embs = [tables[i][x_int[:, i]] for i in range(NUM_FEATS)]
    xe = jnp.concatenate(embs, axis=1)                              # (B, 10)
    h = jnp.dot(xe, w1, preferred_element_type=jnp.float32) + b1
    y = jnp.dot(h, w2, preferred_element_type=jnp.float32) + b2
    return jnp.maximum(y, 0.0)


def make_inputs(key, batch):
    xkeys = jax.random.split(key, NUM_FEATS)
    cols = [jax.random.randint(xkeys[i], (batch, 1), 0, n, dtype=jnp.int32)
            for i, (n, _) in enumerate(EMBEDDING_DIMS)]
    return jnp.concatenate(cols, axis=1)                            # (batch, 6) int32


if __name__ == "__main__":
    key = jax.random.PRNGKey(0)
    pkey, xkey_small, xkey_big = jax.random.split(key, 3)

    tables, w1, b1, w2, b2, w_full, b_full = make_params(pkey)

    # Small deterministic batch (B=8 patients, 6 categorical features each).
    x_small = make_inputs(xkey_small, 8)
    out_small = jax.block_until_ready(clinicalnet_forward(x_small, w_full, b_full))
    ref_small = jax.block_until_ready(reference_forward(x_small, tables, w1, b1, w2, b2))
    assert out_small.shape == (8, OUT)
    assert jnp.allclose(out_small, ref_small, rtol=2e-2, atol=2e-2), "mismatch vs JAX reference (B=8)"

    # Larger ragged batch to exercise the multi-tile grid + padding path (Bp != B).
    x_big = make_inputs(xkey_big, 300)
    out_big = jax.block_until_ready(clinicalnet_forward(x_big, w_full, b_full))
    ref_big = jax.block_until_ready(reference_forward(x_big, tables, w1, b1, w2, b2))
    assert out_big.shape == (300, OUT)
    assert jnp.allclose(out_big, ref_big, rtol=2e-2, atol=2e-2), "mismatch vs JAX reference (B=300)"

    print("KERNEL_OK")
</pallas_src>

<mosaic_0001>
module attributes {stable_mosaic.version = 11 : i64} {
  func.func @clinicalnet_kernel(%arg0: i32, %arg1: memref<8x6xi32, #tpu.memory_space<vmem>>, %arg2: memref<128x512xbf16, #tpu.memory_space<vmem>>, %arg3: memref<1x512xf32, #tpu.memory_space<vmem>>, %arg4: memref<8x512xf32, #tpu.memory_space<vmem>>) attributes {dimension_semantics = [#tpu.dimension_semantics<parallel>], iteration_bounds = array<i64: 2>, scalar_prefetch = 0 : i64, scratch_operands = 0 : i64, tpu.core_type = #tpu.core_type<tc>, window_params = [{transform_indices = @transform_0, window_bounds = array<i64: 8, 6>}, {pipeline_mode = #tpu.pipeline_mode<synchronous>, transform_indices = @transform_1, window_bounds = array<i64: 128, 512>}, {pipeline_mode = #tpu.pipeline_mode<synchronous>, transform_indices = @transform_2, window_bounds = array<i64: 1, 512>}, {transform_indices = @transform_3, window_bounds = array<i64: 8, 512>}]} {
    %0 = tpu.iota {dimensions = array<i32: 1>} : vector<8x128xi32>
    %c0 = arith.constant 0 : index
    %c0_0 = arith.constant 0 : index
    %1 = vector.load %arg1[%c0, %c0_0] : memref<8x6xi32, #tpu.memory_space<vmem>>, vector<8x1xi32>
    %c0_i32 = arith.constant 0 : i32
    %c5_i32 = arith.constant 5 : i32
    %2 = vector.broadcast %c0_i32 : i32 to vector<8x1xi32>
    %3 = arith.maxsi %2, %1 : vector<8x1xi32>
    %4 = vector.broadcast %c5_i32 : i32 to vector<8x1xi32>
    %5 = arith.minsi %4, %3 : vector<8x1xi32>
    %c0_i32_1 = arith.constant 0 : i32
    %6 = vector.broadcast %c0_i32_1 : i32 to vector<8x1xi32>
    %7 = arith.addi %5, %6 : vector<8x1xi32>
    %8 = vector.broadcast %7 : vector<8x1xi32> to vector<8x128xi32>
    %9 = arith.cmpi eq, %0, %8 : vector<8x128xi32>
    %c0_2 = arith.constant 0 : index
    %c1 = arith.constant 1 : index
    %10 = vector.load %arg1[%c0_2, %c1] : memref<8x6xi32, #tpu.memory_space<vmem>>, vector<8x1xi32>
    %c0_i32_3 = arith.constant 0 : i32
    %c2_i32 = arith.constant 2 : i32
    %11 = vector.broadcast %c0_i32_3 : i32 to vector<8x1xi32>
    %12 = arith.maxsi %11, %10 : vector<8x1xi32>
    %13 = vector.broadcast %c2_i32 : i32 to vector<8x1xi32>
    %14 = arith.minsi %13, %12 : vector<8x1xi32>
    %c6_i32 = arith.constant 6 : i32
    %15 = vector.broadcast %c6_i32 : i32 to vector<8x1xi32>
    %16 = arith.addi %14, %15 : vector<8x1xi32>
    %17 = vector.broadcast %16 : vector<8x1xi32> to vector<8x128xi32>
    %18 = arith.cmpi eq, %0, %17 : vector<8x128xi32>
    %19 = arith.ori %9, %18 : vector<8x128xi1>
    %c0_4 = arith.constant 0 : index
    %c2 = arith.constant 2 : index
    %20 = vector.load %arg1[%c0_4, %c2] : memref<8x6xi32, #tpu.memory_space<vmem>>, vector<8x1xi32>
    %c0_i32_5 = arith.constant 0 : i32
    %c1_i32 = arith.constant 1 : i32
    %21 = vector.broadcast %c0_i32_5 : i32 to vector<8x1xi32>
    %22 = arith.maxsi %21, %20 : vector<8x1xi32>
    %23 = vector.broadcast %c1_i32 : i32 to vector<8x1xi32>
    %24 = arith.minsi %23, %22 : vector<8x1xi32>
    %c9_i32 = arith.constant 9 : i32
    %25 = vector.broadcast %c9_i32 : i32 to vector<8x1xi32>
    %26 = arith.addi %24, %25 : vector<8x1xi32>
    %27 = vector.broadcast %26 : vector<8x1xi32> to vector<8x128xi32>
    %28 = arith.cmpi eq, %0, %27 : vector<8x128xi32>
    %29 = arith.ori %19, %28 : vector<8x128xi1>
    %c0_6 = arith.constant 0 : index
    %c3 = arith.constant 3 : index
    %30 = vector.load %arg1[%c0_6, %c3] : memref<8x6xi32, #tpu.memory_space<vmem>>, vector<8x1xi32>
    %c0_i32_7 = arith.constant 0 : i32
    %c2_i32_8 = arith.constant 2 : i32
    %31 = vector.broadcast %c0_i32_7 : i32 to vector<8x1xi32>
    %32 = arith.maxsi %31, %30 : vector<8x1xi32>
    %33 = vector.broadcast %c2_i32_8 : i32 to vector<8x1xi32>
    %34 = arith.minsi %33, %32 : vector<8x1xi32>
    %c11_i32 = arith.constant 11 : i32
    %35 = vector.broadcast %c11_i32 : i32 to vector<8x1xi32>
    %36 = arith.addi %34, %35 : vector<8x1xi32>
    %37 = vector.broadcast %36 : vector<8x1xi32> to vector<8x128xi32>
    %38 = arith.cmpi eq, %0, %37 : vector<8x128xi32>
    %39 = arith.ori %29, %38 : vector<8x128xi1>
    %c0_9 = arith.constant 0 : index
    %c4 = arith.constant 4 : index
    %40 = vector.load %arg1[%c0_9, %c4] : memref<8x6xi32, #tpu.memory_space<vmem>>, vector<8x1xi32>
    %c0_i32_10 = arith.constant 0 : i32
    %c3_i32 = arith.constant 3 : i32
    %41 = vector.broadcast %c0_i32_10 : i32 to vector<8x1xi32>
    %42 = arith.maxsi %41, %40 : vector<8x1xi32>
    %43 = vector.broadcast %c3_i32 : i32 to vector<8x1xi32>
    %44 = arith.minsi %43, %42 : vector<8x1xi32>
    %c14_i32 = arith.constant 14 : i32
    %45 = vector.broadcast %c14_i32 : i32 to vector<8x1xi32>
    %46 = arith.addi %44, %45 : vector<8x1xi32>
    %47 = vector.broadcast %46 : vector<8x1xi32> to vector<8x128xi32>
    %48 = arith.cmpi eq, %0, %47 : vector<8x128xi32>
    %49 = arith.ori %39, %48 : vector<8x128xi1>
    %c0_11 = arith.constant 0 : index
    %c5 = arith.constant 5 : index
    %50 = vector.load %arg1[%c0_11, %c5] : memref<8x6xi32, #tpu.memory_space<vmem>>, vector<8x1xi32>
    %c0_i32_12 = arith.constant 0 : i32
    %c4_i32 = arith.constant 4 : i32
    %51 = vector.broadcast %c0_i32_12 : i32 to vector<8x1xi32>
    %52 = arith.maxsi %51, %50 : vector<8x1xi32>
    %53 = vector.broadcast %c4_i32 : i32 to vector<8x1xi32>
    %54 = arith.minsi %53, %52 : vector<8x1xi32>
    %c18_i32 = arith.constant 18 : i32
    %55 = vector.broadcast %c18_i32 : i32 to vector<8x1xi32>
    %56 = arith.addi %54, %55 : vector<8x1xi32>
    %57 = vector.broadcast %56 : vector<8x1xi32> to vector<8x128xi32>
    %58 = arith.cmpi eq, %0, %57 : vector<8x128xi32>
    %59 = arith.ori %49, %58 : vector<8x128xi1>
    %60 = arith.extui %59 : vector<8x128xi1> to vector<8x128xi32>
    %61 = arith.sitofp %60 : vector<8x128xi32> to vector<8x128xf32>
    %62 = arith.truncf %61 : vector<8x128xf32> to vector<8x128xbf16>
    %c0_13 = arith.constant 0 : index
    %c0_14 = arith.constant 0 : index
    %63 = vector.load %arg2[%c0_13, %c0_14] : memref<128x512xbf16, #tpu.memory_space<vmem>>, vector<128x512xbf16>
    %cst = arith.constant dense<0.000000e+00> : vector<8x512xf32>
    %64 = tpu.matmul %62, %63, %cst {dimension_numbers = #tpu.dot_dimension_numbers<[1], [0], [0], [1], [0, 0, 1, 1], [], []>} : vector<8x128xbf16>, vector<128x512xbf16>, vector<8x512xf32> -> vector<8x512xf32>
    %c0_15 = arith.constant 0 : index
    %c0_16 = arith.constant 0 : index
    %65 = vector.load %arg3[%c0_15, %c0_16] : memref<1x512xf32, #tpu.memory_space<vmem>>, vector<1x512xf32>
    %66 = vector.broadcast %65 : vector<1x512xf32> to vector<8x512xf32>
    %67 = arith.addf %64, %66 : vector<8x512xf32>
    %cst_17 = arith.constant 0.000000e+00 : f32
    %68 = vector.broadcast %cst_17 : f32 to vector<8x512xf32>
    %69 = arith.maximumf %67, %68 : vector<8x512xf32>
    %c0_18 = arith.constant 0 : index
    %c0_19 = arith.constant 0 : index
    %70 = vector.load %arg4[%c0_18, %c0_19] : memref<8x512xf32, #tpu.memory_space<vmem>>, vector<8x512xf32>
    tpu.vector_store %arg4[%c0_18, %c0_19], %69 {strides = array<i32>} : memref<8x512xf32, #tpu.memory_space<vmem>>, vector<8x512xf32>,
    return
  }
  func.func @transform_0(%arg0: i32) -> (i32, i32) {
    %c0_i32 = arith.constant 0 : i32
    %c0_i32_0 = arith.constant 0 : i32
    return %arg0, %c0_i32 : i32, i32
  }
  func.func @transform_1(%arg0: i32) -> (i32, i32) {
    %c0_i32 = arith.constant 0 : i32
    %c0_i32_0 = arith.constant 0 : i32
    %c0_i32_1 = arith.constant 0 : i32
    return %c0_i32, %c0_i32_0 : i32, i32
  }
  func.func @transform_2(%arg0: i32) -> (i32, i32) {
    %c0_i32 = arith.constant 0 : i32
    %c0_i32_0 = arith.constant 0 : i32
    %c0_i32_1 = arith.constant 0 : i32
    return %c0_i32, %c0_i32_0 : i32, i32
  }
  func.func @transform_3(%arg0: i32) -> (i32, i32) {
    %c0_i32 = arith.constant 0 : i32
    %c0_i32_0 = arith.constant 0 : i32
    return %arg0, %c0_i32 : i32, i32
  }
}

</mosaic_0001>

<bundles_post_ra>
// kernel: clinicalnet_forward.1
= control target key start
LH: loop header
LB: loop body
LE: loop exit
PB: predicated region body
PF: predicated region fallthrough
CT: control target
= control target key end

     0   :  { %8 = vsyncpa [#allocation3], 0  ;;  %s803_s12 = smov 0   ;;  %s849_s0 = inlined_call_operand.vmem [shape: s32[16,6], index: 0, kind: input, shape index: {}]   ;;  %s850_s1 = inlined_call_operand.hbm [shape: bf16[128,512], index: 1, kind: input, shape index: {}]   ;;  %s851_s2 = inlined_call_operand.vmem [shape: f32[1,512], index: 2, kind: input, shape index: {}]   ;;  %s852_s3 = inlined_call_operand.vmem [shape: f32[16,512], index: 3, kind: output, shape index: {}]  }
   0x1 LB: > { %s809_s13 = sadd.s32 4294967295, %s771_s12   ;;  %p609_p0 = scmp.ge.s32.totalorder %s771_s12, 1  ;;  %s771_s12 = sphi %s803_s12, %s14_s12  }
   0x2   : > { %p113_p1 = scmp.lt.s32.totalorder %s771_s12, 3  ;;  %s773_s14 = smov [#allocation2]  }
   0x3   : > { %s125_s15 = sshll.u32 %s773_s14, 4  ;;  %p661_p3 = scmp.eq.s32.totalorder %s809_s13, 0  ;;  %s126_s15 = int_to_ptr.vmem [resolvable:$true] %s125_s15 }
   0x4   : > { %p813_p2 = pnand %p609_p0, %p113_p1  ;;  %s746_s17 = scalar_lea.vmem %s126_s15, 4096 }
   0x5   : > { %p747_p7 = scmp.ne.s32.totalorder %s126_s15, %s746_s17  ;;  %p754_p10 = scmp.lt.s32.totalorder %s126_s15, %s126_s15 }
   0x6   : > { %p657_p4 = pneg %p813_p2  ;;  %p755_p11 = scmp.lt.s32.totalorder %s746_s17, %s746_s17 }
   0x8   : > { %p658_p5 = pnand %p661_p3, %p657_p4  ;;  %p756_p12 = por %p755_p11, %p754_p10 }
   0xa   : > { %p737_p6 = pneg %p658_p5 }
   0xc   : > { %p749_p8 = pnand %p747_p7, %p737_p6 }
   0xe   : > { %p750_p9 = pneg %p749_p8 }
  0x10   : > { %p757_p13 = pnand %p756_p12, %p750_p9 }
  0x12   : > { %760 = shalt.err (!%p757_p13)
}
  0x13   : > { %s774_s18 = smov 256   ;;  %s775_s19 = smov 16  }
  0x14   : > { %660 = dma.hbm_to_vmem [thread:$0]  (!%p658_p5), %s850_s1, 4096, %s126_s15, [#allocation3], %s774_s18, %s774_s18, %s775_s19  }
  0x15   : > { %151 = sbr.rel (%p813_p2) target bundleno = 379 (0x17b), region = 32 }
  0x1a   : > { %766 = dma.done.wait (%p661_p3), [#allocation3], 4096  }
  0x1b   : > { %768 = vsyncadd (%p661_p3), [#allocation3], 4294963200  ;;  %p174_p0 = scmp.lt.s32.totalorder %s809_s13, 1  ;;  %v776_v0 = vmov 0   ;;  %v777_v1 = vmov 2   ;;  %v778_v20 = vmov 1   ;;  %v184_v50 = vlaneseq }
  0x1c   : > { %681 = vset.pattern.permute.xlu0 %v776_v0  ;;  %683 = vset.pattern.permute.xlu1 %v777_v1  ;;  %v687_v3 = vld [vmem:[#allocation2 + $0xe4] ss:$16 sps:$4 sm:$0xff]   ;;  %v689_v5 = vld [vmem:[#allocation2 + $0xec] ss:$16 sps:$4 sm:$0xff]   ;;  %v691_v6 = vld [vmem:[#allocation2 + $0xe0] ss:$16 sps:$4 sm:$0xff]  }
  0x1d   : > { %s855_s13 = smov (!%p174_p0, %s809_s13), 1  ;;  %482 = vmatprep.mubr.bf16.mxu0 %v776_v0  ;;  %523 = vmatprep.mubr.bf16.mxu1 %v776_v0  ;;  %v692_v7 = vld [vmem:[#allocation2 + $0xe8] ss:$16 sps:$4 sm:$0xff]   ;;  %v693_v13 = vld [vmem:[#allocation2 + $0xc4] ss:$16 sps:$4 sm:$0xff]   ;;  %v779_v26 = vmov 3  }
  0x1e   : > { %s614_s22 = sshll.u32 %s855_s13, 3  ;;  %450 = vmatprep.subr.bf16.mxu0 %v687_v3  ;;  %491 = vmatprep.subr.bf16.mxu1 %v689_v5  ;;  %v695_v14 = vld [vmem:[#allocation2 + $0xcc] ss:$16 sps:$4 sm:$0xff]   ;;  %v697_v15 = vld [vmem:[#allocation2 + $0xc0] ss:$16 sps:$4 sm:$0xff]   ;;  %v780_v32 = vmov 5  }
  0x1f   : > { %s177_s25 = scalar_lea.vmem %s849_s0, %s614_s22  ;;  %451 = vmatpush1.bf16.msra.mxu0 %v691_v6  ;;  %492 = vmatpush1.bf16.msra.mxu1 %v692_v7  ;;  %v698_v16 = vld [vmem:[#allocation2 + $0xc8] ss:$16 sps:$4 sm:$0xff]   ;;  %v699_v19 = vld [vmem:[#allocation2 + $0xa4] ss:$16 sps:$4 sm:$0xff]   ;;  %v701_v21 = vld [vmem:[#allocation2 + $0xac] ss:$16 sps:$4 sm:$0xff]  }
  0x20   : > { %v186_v2 = vld [vmem:[%s177_s25] sm:$0xff]  ;;  %452 = vmatprep.subr.bf16.mxu0 %v693_v13  ;;  %493 = vmatprep.subr.bf16.mxu1 %v695_v14  ;;  %v704_v23 = vld [vmem:[#allocation2 + $0xa8] ss:$16 sps:$4 sm:$0xff]   ;;  %v707_v28 = vld [vmem:[#allocation2 + $0x8c] ss:$16 sps:$4 sm:$0xff]   ;;  %v781_v35 = vmov 4  }
  0x21   : > { %vm187_vm0 = vcmp.gt.s32.totalorder %v186_v2, 0  ;;  %v703_v22 = vld [vmem:[#allocation2 + $0xa0] ss:$16 sps:$4 sm:$0xff]   ;;  %v705_v25 = vld [vmem:[#allocation2 + $0x84] ss:$16 sps:$4 sm:$0xff]   ;;  %v185_v52 = vand.u32 127, %v184_v50 }
  0x22   : > { %v188_v4 = vsel %vm187_vm0, %v186_v2, 0  ;;  %v709_v29 = vld [vmem:[#allocation2 + $0x80] ss:$16 sps:$4 sm:$0xff]   ;;  %v710_v31 = vld [vmem:[#allocation2 + $0x88] ss:$16 sps:$4 sm:$0xff]   ;;  %v782_v58 = vmov 0.0  }
  0x23   : > { %vm189_vm1 = vcmp.lt.s32.totalorder %v188_v4, 5  ;;  %vm203_vm2 = vcmp.lt.s32.totalorder %v188_v4, 1  ;;  %vm195_vm3 = vcmp.lt.s32.totalorder %v188_v4, 2  ;;  %vm225_vm4 = vcmp.lt.s32.totalorder %v188_v4, 4  ;;  %453 = vmatpush1.bf16.msra.mxu0 %v697_v15  ;;  %494 = vmatpush1.bf16.msra.mxu1 %v698_v16  ;;  %v711_v33 = vld [vmem:[#allocation2 + $0x64] ss:$16 sps:$4 sm:$0xff]  }
  0x24   : > { %v190_v8 = vsel %vm189_vm1, %v188_v4, 5  ;;  %v204_v9 = vsel %vm203_vm2, %v188_v4, 1  ;;  %v196_v10 = vsel %vm195_vm3, %v188_v4, 2  ;;  %vm217_vm5 = vcmp.lt.s32.totalorder %v188_v4, 3  ;;  %454 = vmatprep.subr.bf16.mxu0 %v699_v19  ;;  %495 = vmatprep.subr.bf16.mxu1 %v701_v21  ;;  %v713_v34 = vld [vmem:[#allocation2 + $0x6c] ss:$16 sps:$4 sm:$0xff]  }
  0x25   : > { %192 = vperm.xlu0 %681, %v190_v8   ;;  %v205_v11 = vadd.s32 9, %v204_v9  ;;  %v197_v12 = vadd.s32 6, %v196_v10  ;;  %v211_v17 = vadd.s32 11, %v196_v10  ;;  %v226_v18 = vsel %vm225_vm4, %v188_v4, 4  ;;  %v715_v36 = vld [vmem:[#allocation2 + $0x60] ss:$16 sps:$4 sm:$0xff]  }
  0x26   : > { %v218_v24 = vsel %vm217_vm5, %v188_v4, 3  ;;  %v227_v27 = vadd.s32 18, %v226_v18  ;;  %v716_v37 = vld [vmem:[#allocation2 + $0x68] ss:$16 sps:$4 sm:$0xff]   ;;  %v717_v38 = vld [vmem:[#allocation2 + $0x44] ss:$16 sps:$4 sm:$0xff]  }
  0x27   : > { %207 = vperm.xlu1 %683, %v205_v11   ;;  %455 = vmatpush1.bf16.msra.mxu0 %v703_v22  ;;  %v219_v30 = vadd.s32 14, %v218_v24  ;;  %v719_v39 = vld [vmem:[#allocation2 + $0x4c] ss:$16 sps:$4 sm:$0xff]   ;;  %v721_v40 = vld [vmem:[#allocation2 + $0x40] ss:$16 sps:$4 sm:$0xff]   ;;  %v271_v61 = vshrl.u32 %v184_v50, 7 }
  0x28   : > { %496 = vmatpush1.bf16.msra.mxu1 %v704_v23  ;;  %456 = vmatprep.subr.bf16.mxu0 %v705_v25  ;;  %v722_v41 = vld [vmem:[#allocation2 + $0x48] ss:$16 sps:$4 sm:$0xff]   ;;  %v723_v42 = vld [vmem:[#allocation2 + $0x24] ss:$16 sps:$4 sm:$0xff]   ;;  %v725_v43 = vld [vmem:[#allocation2 + $0x2c] ss:$16 sps:$4 sm:$0xff]  }
  0x29   : > { %682 = vset.pattern.permute.xlu0 %v778_v20  ;;  %497 = vmatprep.subr.bf16.mxu1 %v707_v28  ;;  %v727_v44 = vld [vmem:[#allocation2 + $0x20] ss:$16 sps:$4 sm:$0xff]   ;;  %v728_v45 = vld [vmem:[#allocation2 + $0x28] ss:$16 sps:$4 sm:$0xff]   ;;  %v729_v46 = vld [vmem:[#allocation2 + $0x4] ss:$16 sps:$4 sm:$0xff]  }
  0x2a   : > { %199 = vperm.xlu0 %682, %v197_v12   ;;  %v731_v47 = vld [vmem:[#allocation2 + $0xc] ss:$16 sps:$4 sm:$0xff]   ;;  %v733_v48 = vld [vmem:[#allocation2] ss:$16 sps:$4 sm:$0xff]   ;;  %v734_v49 = vld [vmem:[#allocation2 + $0x8] ss:$16 sps:$4 sm:$0xff]  }
  0x2b   : > { %684 = vset.pattern.permute.xlu1 %v779_v26  ;;  %457 = vmatpush1.bf16.msra.mxu0 %v709_v29  ;;  %v272_v62 = vsub.s32 0, %v271_v61  ;;  %v280_v63 = vsub.s32 2, %v271_v61  ;;  %v268_v0 = vld [vmem:[%s851_s2] sm:$0xf]  ;;  %v276_v1 = vsub.s32 1, %v271_v61  ;;  %v284_v2 = vsub.s32 3, %v271_v61 }
  0x2c   : > { %213 = vperm.xlu1 %684, %v211_v17   ;;  %498 = vmatpush1.bf16.msra.mxu1 %v710_v31  ;;  %s652_s28 = sshll.u32 %s855_s13, 5 }
  0x2d   : > { %458 = vmatprep.subr.bf16.mxu0 %v711_v33  ;;  %499 = vmatprep.subr.bf16.mxu1 %v713_v34  ;;  %v273_v3 = vrot.slane %v268_v0, %v272_v62  ;;  %v281_v4 = vrot.slane %v268_v0, %v280_v63  ;;  %v277_v5 = vrot.slane %v268_v0, %v276_v1  ;;  %s182_s4 = scalar_lea.vmem %s852_s3, %s652_s28 }
  0x2e   : > { %686 = vset.pattern.permute.xlu0 %v780_v32  ;;  %v285_v6 = vrot.slane %v268_v0, %v284_v2 }
  0x2f   : > { %229 = vperm.xlu0 %686, %v227_v27   ;;  %459 = vmatpush1.bf16.msra.mxu0 %v715_v36 }
  0x30   : > { %685 = vset.pattern.permute.xlu1 %v781_v35  ;;  %500 = vmatpush1.bf16.msra.mxu1 %v716_v37 }
  0x31   : > { %221 = vperm.xlu1 %685, %v219_v30   ;;  %460 = vmatprep.subr.bf16.mxu0 %v717_v38 }
  0x32   : > { %501 = vmatprep.subr.bf16.mxu1 %v719_v39 }
  0x33   : > { %461 = vmatpush1.bf16.msra.mxu0 %v721_v40 }
  0x34   : > { %502 = vmatpush1.bf16.msra.mxu1 %v722_v41  ;;  %462 = vmatprep.subr.bf16.mxu0 %v723_v42 }
  0x35   : > { %503 = vmatprep.subr.bf16.mxu1 %v725_v43 }
  0x37   : > { %463 = vmatpush1.bf16.msra.mxu0 %v727_v44 }
  0x38   : > { %504 = vmatpush1.bf16.msra.mxu1 %v728_v45  ;;  %464 = vmatprep.subr.bf16.mxu0 %v729_v46 }
  0x39   : > { %505 = vmatprep.subr.bf16.mxu1 %v731_v47 }
  0x3b   : > { %465 = vmatpush1.bf16.msra.mxu0 %v733_v48 }
  0x3c   : > { %506 = vmatpush1.bf16.msra.mxu1 %v734_v49 }
  0xa0   : > { %v193_v51 = vpop.permute.xlu0 %192 }
  0xa1   : > { %vm194_vm6 = vcmp.eq.s32.totalorder %v185_v52, %v193_v51 }
  0xa2   : > { %v208_v53 = vpop.permute.xlu1 %207 }
  0xa3   : > { %vm209_vm9 = vcmp.eq.s32.totalorder %v185_v52, %v208_v53 }
  0xa5   : > { %v200_v54 = vpop.permute.xlu0 %199 }
  0xa6   : > { %vm201_vm7 = vcmp.eq.s32.totalorder %v185_v52, %v200_v54 }
  0xa7   : > { %vm202_vm8 = vmor %vm194_vm6, %vm201_vm7  ;;  %v214_v55 = vpop.permute.xlu1 %213 }
  0xa8   : > { %vm210_vm10 = vmor %vm202_vm8, %vm209_vm9  ;;  %vm215_vm11 = vcmp.eq.s32.totalorder %v185_v52, %v214_v55 }
  0xa9   : > { %vm216_vm13 = vmor %vm210_vm10, %vm215_vm11 }
  0xaa   : > { %v230_v56 = vpop.permute.xlu0 %229 }
  0xab   : > { %vm231_vm12 = vcmp.eq.s32.totalorder %v185_v52, %v230_v56 }
  0xac   : > { %v222_v57 = vpop.permute.xlu1 %221 }
  0xad   : > { %vm223_vm14 = vcmp.eq.s32.totalorder %v185_v52, %v222_v57 }
  0xae   : > { %vm224_vm15 = vmor %vm216_vm13, %vm223_vm14 }
  0xaf   : > { %vm232_vm0 = vmor %vm224_vm15, %vm231_vm12 }
  0xb0   : > { %v617_v59 = vsel %vm232_vm0, 1.0, %v782_v58 }
  0xb1   : > { %v235_v60 = vpack.c.bf16 %v617_v59, %v617_v59 }
  0xb3   : > { %483 = vmatmul.mubr.bf16.vlgmr.msra.gmra.mxu0 %v235_v60  ;;  %524 = vmatmul.mubr.bf16.vlgmr.msra.gmra.mxu1 %v235_v60 }
 0x173   : > { %v484_v7 = vpop.f32.mrf.mxu0  ;;  %v525_v8 = vpop.f32.mrf.mxu1 }
 0x174   : > { %v485_v9 = vadd.f32 %v484_v7, %v273_v3  ;;  %v526_v10 = vadd.f32 %v525_v8, %v281_v4 }
 0x175   : > { %v486_v11 = vpop.f32.mrf.mxu0  ;;  %v527_v12 = vpop.f32.mrf.mxu1 }
 0x176   : > { %v532_v13 = vmax.f32 %v485_v9, 0.0  ;;  %v534_v14 = vmax.f32 %v526_v10, 0.0  ;;  %v487_v15 = vadd.f32 %v486_v11, %v277_v5  ;;  %v528_v16 = vadd.f32 %v527_v12, %v285_v6 }
 0x177   : > { %v488_v17 = vpop.f32.mrf.mxu0  ;;  %v529_v18 = vpop.f32.mrf.mxu1 }
 0x178   : > { %536 = vst [vmem:[%s182_s4] sm:$0xff] %v532_v13  ;;  %538 = vst [vmem:[%s182_s4 + $0x10] sm:$0xff] %v534_v14  ;;  %v533_v19 = vmax.f32 %v487_v15, 0.0  ;;  %v535_v20 = vmax.f32 %v528_v16, 0.0 }
 0x179   : > { %v489_v21 = vpop.f32.mrf.mxu0  ;;  %v530_v22 = vpop.f32.mrf.mxu1 }
 0x17a   : > { %537 = vst [vmem:[%s182_s4 + $0x8] sm:$0xff] %v533_v19  ;;  %539 = vst [vmem:[%s182_s4 + $0x18] sm:$0xff] %v535_v20 }
 0x17b PF: > { %s14_s12 = sadd.s32 1, %s771_s12  }
 0x17c   : > { %p11_p1 = scmp.ge.s32.totalorder %s14_s12, 4  }
 0x17e   :  { %13 = sbr.rel (!%p11_p1) target bundleno = 1 (0x1), region = 67 }
 0x183   :  { %561 = vsyncpa [#allocation3], 1 }
 0x184   :  { %563 = vsyncpa [#allocation3 + $0x1], 1 }

</bundles_post_ra>
